<compile_context>
chip_gen: v6e
topology: v6e:2x2x1
jax: 0.10.0
libtpu: 0.0.40
codegen_flags: <defaults>
</compile_context>

<pallas_src>
import functools

import jax
import jax.numpy as jnp
from jax import lax
from jax.experimental import pallas as pl
from jax.experimental.pallas import tpu as pltpu

GAMMA = 1.5
ALPHA = 0.25
LANES = 128
SUBLANES = 8
ROW_ALIGN = 32          # multiple of 8 sublanes; also packs bf16/int8 cleanly
MAX_TILE_ROWS = 4096    # (4096,128) f32 block = 2 MiB; 2 inputs double-buffered
                        # + full-tile acc ~ 10 MiB VMEM (fits default limits)


def _round_up(x, m):
    return -(-x // m) * m


def _focal_loss_kernel(pred_ref, true_ref, out_ref, acc_ref, *, gamma, alpha):
    t = pl.program_id(1)

    @pl.when(t == 0)
    def _():
        acc_ref[...] = jnp.zeros_like(acc_ref)

    x = pred_ref[...].astype(jnp.float32)   # logits
    z = true_ref[...].astype(jnp.float32)   # targets

    # BCEWithLogitsLoss (reduction='none'), numerically stable:
    #   max(x, 0) - x*z + log1p(exp(-|x|))
    e = jnp.exp(-jnp.abs(x))                # single EUP exp, reused for sigmoid
    bce = jnp.maximum(x, 0.0) - x * z + jnp.log1p(e)

    # sigmoid(x) reusing e = exp(-|x|):  x>=0 -> 1/(1+e),  x<0 -> e/(1+e)
    inv = 1.0 / (1.0 + e)
    pred_prob = jnp.where(x >= 0.0, inv, e * inv)

    p_t = z * pred_prob + (1.0 - z) * (1.0 - pred_prob)
    alpha_factor = z * alpha + (1.0 - z) * (1.0 - alpha)
    tm = jnp.maximum(1.0 - p_t, 0.0)        # clamp: no NaN from tiny negatives
    if gamma == 1.5:
        modulating_factor = tm * jnp.sqrt(tm)   # cheaper than pow (no log+exp)
    elif gamma == 2.0:
        modulating_factor = tm * tm
    elif gamma == 1.0:
        modulating_factor = tm
    else:
        modulating_factor = tm ** gamma

    # Vector accumulator: steady-state loop is VPU/DMA-only; the cross-lane
    # reduction happens once per parallel slice at the last step.
    acc_ref[...] += bce * alpha_factor * modulating_factor

    @pl.when(t == pl.num_programs(1) - 1)
    def _():
        total = jnp.sum(acc_ref[...])
        row = lax.broadcasted_iota(jnp.int32, (SUBLANES, LANES), 0)
        col = lax.broadcasted_iota(jnp.int32, (SUBLANES, LANES), 1)
        out_ref[...] = jnp.where((row == 0) & (col == 0), total, 0.0)


def focal_loss(pred, true, gamma=GAMMA, alpha=ALPHA, reduction="mean"):
    """Focal loss over NCHW (or any-shape) tensors; matches FocalLoss(BCEWithLogitsLoss())."""
    assert pred.shape == true.shape
    n_elem = pred.size

    flat_pred = pred.reshape(-1)   # keep native dtype; cast happens in-kernel
    flat_true = true.reshape(-1)

    # Lane-dense (rows, 128) slab; tile height sized for HBM streaming but
    # shrunk for small inputs so we never over-pad.
    n_rows_raw = -(-n_elem // LANES)
    tile_rows = min(MAX_TILE_ROWS, _round_up(max(n_rows_raw, 1), ROW_ALIGN))
    tile_elems = tile_rows * LANES
    n_pad = (-n_elem) % tile_elems
    if n_pad:
        # Pad values (pred=+100, true=1) contribute exactly zero loss:
        # sigmoid(100)==1 -> p_t==1 -> (1-p_t)^gamma==0, so no mask stream needed.
        # TODO(synk): for huge inputs whose size is not a tile multiple this still
        # copies the flattened arrays once; an in-kernel tail mask keyed on the
        # (static) element count would avoid that copy.
        flat_pred = jnp.pad(flat_pred, (0, n_pad), constant_values=100.0)
        flat_true = jnp.pad(flat_true, (0, n_pad), constant_values=1.0)

    n_rows = (n_elem + n_pad) // LANES
    n_tiles = n_rows // tile_rows
    pred2d = flat_pred.reshape(n_rows, LANES)
    true2d = flat_true.reshape(n_rows, LANES)

    # Leading 'parallel' axis -> v7x's two TensorCores each stream half the tiles.
    n_par = 2 if (n_tiles >= 2 and n_tiles % 2 == 0) else 1
    n_seq = n_tiles // n_par

    in_spec = pl.BlockSpec((tile_rows, LANES), lambda p, t: (p * n_seq + t, 0))
    # One (8,128)-aligned partial-sum block per parallel slice; only element
    # [0,0] of each block is non-zero, the wrapper sums the whole output.
    out_spec = pl.BlockSpec((SUBLANES, LANES), lambda p, t: (p, 0))

    kernel = functools.partial(_focal_loss_kernel,
                               gamma=float(gamma), alpha=float(alpha))

    partials = pl.pallas_call(
        kernel,
        out_shape=jax.ShapeDtypeStruct((n_par * SUBLANES, LANES), jnp.float32),
        grid_spec=pltpu.PrefetchScalarGridSpec(
            num_scalar_prefetch=0,
            grid=(n_par, n_seq),
            in_specs=[in_spec, in_spec],
            out_specs=out_spec,
            scratch_shapes=[pltpu.VMEM((tile_rows, LANES), jnp.float32)],
        ),
        compiler_params=pltpu.CompilerParams(
            dimension_semantics=("parallel", "arbitrary"),
            vmem_limit_bytes=32 * 1024 * 1024,
        ),
    )(pred2d, true2d)

    total = jnp.sum(partials)

    if reduction == "mean":
        return total / jnp.float32(n_elem)
    elif reduction == "sum":
        return total
    else:
        # TODO(synk): 'none' reduction would return the per-element loss map;
        # this wrapper only materializes the reduced scalar path (as used in YOLO).
        raise NotImplementedError("reduction='none' not supported in this kernel")


def _focal_loss_ref(pred, true, gamma=GAMMA, alpha=ALPHA):
    x = pred.astype(jnp.float32)
    z = true.astype(jnp.float32)
    bce = jnp.maximum(x, 0.0) - x * z + jnp.log1p(jnp.exp(-jnp.abs(x)))
    p = jax.nn.sigmoid(x)
    p_t = z * p + (1.0 - z) * (1.0 - p)
    alpha_factor = z * alpha + (1.0 - z) * (1.0 - alpha)
    mod = (1.0 - p_t) ** gamma
    return jnp.mean(bce * alpha_factor * mod)


if __name__ == "__main__":
    key = jax.random.PRNGKey(0)
    k1, k2, k3, k4 = jax.random.split(key, 4)

    # NCHW, small shapes: batch=2, channels=4, spatial=16
    pred = jax.random.normal(k1, (2, 4, 16, 16), dtype=jnp.float32) * 2.0
    true = (jax.random.uniform(k2, (2, 4, 16, 16)) > 0.7).astype(jnp.float32)

    out = focal_loss(pred, true)
    out = jax.block_until_ready(out)
    ref = _focal_loss_ref(pred, true)
    assert jnp.allclose(out, ref, rtol=1e-5, atol=1e-6), (out, ref)

    # Ragged shape (element count not a multiple of 128) exercises the
    # zero-contribution pad path (no mask stream).
    pred_r = jax.random.normal(k3, (2, 3, 20, 20), dtype=jnp.float32) * 2.0
    true_r = (jax.random.uniform(k4, (2, 3, 20, 20)) > 0.7).astype(jnp.float32)
    out_r = jax.block_until_ready(focal_loss(pred_r, true_r))
    ref_r = _focal_loss_ref(pred_r, true_r)
    assert jnp.allclose(out_r, ref_r, rtol=1e-5, atol=1e-6), (out_r, ref_r)

    print("KERNEL_OK")
</pallas_src>

<mosaic_0001>
module attributes {stable_mosaic.version = 11 : i64} {
  func.func @_focal_loss_kernel(%arg0: i32, %arg1: i32, %arg2: memref<32x128xf32, #tpu.memory_space<vmem>>, %arg3: memref<32x128xf32, #tpu.memory_space<vmem>>, %arg4: memref<8x128xf32, #tpu.memory_space<vmem>>, %arg5: memref<32x128xf32, #tpu.memory_space<vmem>>) attributes {dimension_semantics = [#tpu.dimension_semantics<parallel>, #tpu.dimension_semantics<arbitrary>], iteration_bounds = array<i64: 1, 1>, scalar_prefetch = 0 : i64, scratch_operands = 1 : i64, tpu.core_type = #tpu.core_type<tc>, window_params = [{transform_indices = @transform_0, window_bounds = array<i64: 32, 128>}, {transform_indices = @transform_1, window_bounds = array<i64: 32, 128>}, {transform_indices = @transform_2, window_bounds = array<i64: 8, 128>}]} {
    %c0_i32 = arith.constant 0 : i32
    %0 = arith.cmpi eq, %arg1, %c0_i32 : i32
    %1 = arith.extui %0 : i1 to i32
    %c0_i32_0 = arith.constant 0 : i32
    %2 = arith.cmpi ne, %1, %c0_i32_0 : i32
    scf.if %2 {
      %cst_21 = arith.constant 0.000000e+00 : f32
      %51 = vector.broadcast %cst_21 : f32 to vector<32x128xf32>
      %c0_22 = arith.constant 0 : index
      %c0_23 = arith.constant 0 : index
      %52 = vector.load %arg5[%c0_22, %c0_23] : memref<32x128xf32, #tpu.memory_space<vmem>>, vector<32x128xf32>
      tpu.vector_store %arg5[%c0_22, %c0_23], %51 {strides = array<i32>} : memref<32x128xf32, #tpu.memory_space<vmem>>, vector<32x128xf32>,
    } else {
    }
    %c0 = arith.constant 0 : index
    %c0_1 = arith.constant 0 : index
    %3 = vector.load %arg2[%c0, %c0_1] : memref<32x128xf32, #tpu.memory_space<vmem>>, vector<32x128xf32>
    %c0_2 = arith.constant 0 : index
    %c0_3 = arith.constant 0 : index
    %4 = vector.load %arg3[%c0_2, %c0_3] : memref<32x128xf32, #tpu.memory_space<vmem>>, vector<32x128xf32>
    %5 = math.absf %3 : vector<32x128xf32>
    %cst = arith.constant 0.000000e+00 : f32
    %6 = vector.broadcast %cst : f32 to vector<32x128xf32>
    %7 = arith.subf %6, %5 : vector<32x128xf32>
    %8 = math.exp %7 : vector<32x128xf32>
    %cst_4 = arith.constant 0.000000e+00 : f32
    %9 = vector.broadcast %cst_4 : f32 to vector<32x128xf32>
    %10 = arith.maximumf %3, %9 : vector<32x128xf32>
    %11 = arith.mulf %3, %4 : vector<32x128xf32>
    %12 = arith.subf %10, %11 : vector<32x128xf32>
    %13 = math.log1p %8 : vector<32x128xf32>
    %14 = arith.addf %12, %13 : vector<32x128xf32>
    %cst_5 = arith.constant 1.000000e+00 : f32
    %15 = vector.broadcast %cst_5 : f32 to vector<32x128xf32>
    %16 = arith.addf %15, %8 : vector<32x128xf32>
    %cst_6 = arith.constant 1.000000e+00 : f32
    %17 = vector.broadcast %cst_6 : f32 to vector<32x128xf32>
    %18 = arith.divf %17, %16 : vector<32x128xf32>
    %cst_7 = arith.constant 0.000000e+00 : f32
    %19 = vector.broadcast %cst_7 : f32 to vector<32x128xf32>
    %20 = arith.cmpf oge, %3, %19 : vector<32x128xf32>
    %21 = arith.mulf %8, %18 : vector<32x128xf32>
    %22 = arith.select %20, %18, %21 : vector<32x128xi1>, vector<32x128xf32>
    %23 = arith.mulf %4, %22 : vector<32x128xf32>
    %cst_8 = arith.constant 1.000000e+00 : f32
    %24 = vector.broadcast %cst_8 : f32 to vector<32x128xf32>
    %25 = arith.subf %24, %4 : vector<32x128xf32>
    %cst_9 = arith.constant 1.000000e+00 : f32
    %26 = vector.broadcast %cst_9 : f32 to vector<32x128xf32>
    %27 = arith.subf %26, %22 : vector<32x128xf32>
    %28 = arith.mulf %25, %27 : vector<32x128xf32>
    %29 = arith.addf %23, %28 : vector<32x128xf32>
    %cst_10 = arith.constant 2.500000e-01 : f32
    %30 = vector.broadcast %cst_10 : f32 to vector<32x128xf32>
    %31 = arith.mulf %4, %30 : vector<32x128xf32>
    %cst_11 = arith.constant 1.000000e+00 : f32
    %32 = vector.broadcast %cst_11 : f32 to vector<32x128xf32>
    %33 = arith.subf %32, %4 : vector<32x128xf32>
    %cst_12 = arith.constant 7.500000e-01 : f32
    %34 = vector.broadcast %cst_12 : f32 to vector<32x128xf32>
    %35 = arith.mulf %33, %34 : vector<32x128xf32>
    %36 = arith.addf %31, %35 : vector<32x128xf32>
    %cst_13 = arith.constant 1.000000e+00 : f32
    %37 = vector.broadcast %cst_13 : f32 to vector<32x128xf32>
    %38 = arith.subf %37, %29 : vector<32x128xf32>
    %cst_14 = arith.constant 0.000000e+00 : f32
    %39 = vector.broadcast %cst_14 : f32 to vector<32x128xf32>
    %40 = arith.maximumf %38, %39 : vector<32x128xf32>
    %41 = math.sqrt %40 : vector<32x128xf32>
    %42 = arith.mulf %40, %41 : vector<32x128xf32>
    %c0_15 = arith.constant 0 : index
    %c0_16 = arith.constant 0 : index
    %43 = vector.load %arg5[%c0_15, %c0_16] : memref<32x128xf32, #tpu.memory_space<vmem>>, vector<32x128xf32>
    %44 = arith.mulf %14, %36 : vector<32x128xf32>
    %45 = arith.mulf %44, %42 : vector<32x128xf32>
    %46 = arith.addf %43, %45 : vector<32x128xf32>
    %c0_17 = arith.constant 0 : index
    %c0_18 = arith.constant 0 : index
    %47 = vector.load %arg5[%c0_17, %c0_18] : memref<32x128xf32, #tpu.memory_space<vmem>>, vector<32x128xf32>
    tpu.vector_store %arg5[%c0_17, %c0_18], %46 {strides = array<i32>} : memref<32x128xf32, #tpu.memory_space<vmem>>, vector<32x128xf32>,
    %c0_i32_19 = arith.constant 0 : i32
    %48 = arith.cmpi eq, %arg1, %c0_i32_19 : i32
    %49 = arith.extui %48 : i1 to i32
    %c0_i32_20 = arith.constant 0 : i32
    %50 = arith.cmpi ne, %49, %c0_i32_20 : i32
    scf.if %50 {
      %c0_21 = arith.constant 0 : index
      %c0_22 = arith.constant 0 : index
      %51 = vector.load %arg5[%c0_21, %c0_22] : memref<32x128xf32, #tpu.memory_space<vmem>>, vector<32x128xf32>
      %52 = vector.shape_cast %51 : vector<32x128xf32> to vector<1x32x128xf32>
      %cst_23 = arith.constant dense<0.000000e+00> : vector<1xf32>
      %53 = vector.multi_reduction <add>, %52, %cst_23 [1, 2] : vector<1x32x128xf32> to vector<1xf32>
      %54 = vector.shape_cast %53 : vector<1xf32> to vector<1x1x1xf32>
      %55 = vector.extract %54[0, 0, 0] : f32 from vector<1x1x1xf32>
      %56 = tpu.iota {dimensions = array<i32: 0>} : vector<8x128xi32>
      %57 = tpu.iota {dimensions = array<i32: 1>} : vector<8x128xi32>
      %c0_i32_24 = arith.constant 0 : i32
      %58 = vector.broadcast %c0_i32_24 : i32 to vector<8x128xi32>
      %59 = arith.cmpi eq, %56, %58 : vector<8x128xi32>
      %c0_i32_25 = arith.constant 0 : i32
      %60 = vector.broadcast %c0_i32_25 : i32 to vector<8x128xi32>
      %61 = arith.cmpi eq, %57, %60 : vector<8x128xi32>
      %62 = arith.andi %59, %61 : vector<8x128xi1>
      %cst_26 = arith.constant 0.000000e+00 : f32
      %63 = vector.broadcast %55 : f32 to vector<8x128xf32>
      %64 = vector.broadcast %cst_26 : f32 to vector<8x128xf32>
      %65 = arith.select %62, %63, %64 : vector<8x128xi1>, vector<8x128xf32>
      %c0_27 = arith.constant 0 : index
      %c0_28 = arith.constant 0 : index
      %66 = vector.load %arg4[%c0_27, %c0_28] : memref<8x128xf32, #tpu.memory_space<vmem>>, vector<8x128xf32>
      tpu.vector_store %arg4[%c0_27, %c0_28], %65 {strides = array<i32>} : memref<8x128xf32, #tpu.memory_space<vmem>>, vector<8x128xf32>,
    } else {
    }
    return
  }
  func.func @transform_0(%arg0: i32, %arg1: i32) -> (i32, i32) {
    %c1_i32 = arith.constant 1 : i32
    %0 = arith.muli %arg0, %c1_i32 : i32
    %1 = arith.addi %0, %arg1 : i32
    %c0_i32 = arith.constant 0 : i32
    %c0_i32_0 = arith.constant 0 : i32
    return %1, %c0_i32 : i32, i32
  }
  func.func @transform_1(%arg0: i32, %arg1: i32) -> (i32, i32) {
    %c1_i32 = arith.constant 1 : i32
    %0 = arith.muli %arg0, %c1_i32 : i32
    %1 = arith.addi %0, %arg1 : i32
    %c0_i32 = arith.constant 0 : i32
    %c0_i32_0 = arith.constant 0 : i32
    return %1, %c0_i32 : i32, i32
  }
  func.func @transform_2(%arg0: i32, %arg1: i32) -> (i32, i32) {
    %c0_i32 = arith.constant 0 : i32
    %c0_i32_0 = arith.constant 0 : i32
    return %arg0, %c0_i32 : i32, i32
  }
}

</mosaic_0001>

<bundles_post_ra>
// kernel: tpu_custom_call.1
= control target key start
LH: loop header
LB: loop body
LE: loop exit
PB: predicated region body
PF: predicated region fallthrough
CT: control target
= control target key end

     0   :  { %7 = vsyncpa [#allocation4], 0  ;;  %s602_s0 = inlined_call_operand.hbm [shape: f32[32,128], index: 0, kind: input, shape index: {}]   ;;  %s603_s1 = inlined_call_operand.hbm [shape: f32[32,128], index: 1, kind: input, shape index: {}]   ;;  %s604_s2 = inlined_call_operand.hbm [shape: f32[8,128], index: 2, kind: output, shape index: {}]  }
   0x1   :  { %8 = vsyncpa [#allocation7], 0 }
   0x2   :  { %9 = vsyncpa [#allocation5], 0  ;;  %s402_s9 = smov [#allocation3]  }
   0x3   :  { %s19_s10 = sshll.u32 %s402_s9, 4  ;;  %s20_s10 = int_to_ptr.vmem [resolvable:$true] %s19_s10 }
   0x4   :  { %s344_s11 = scalar_lea.vmem %s20_s10, 512  ;;  %p349_p1 = scmp.lt.s32.totalorder %s20_s10, %s20_s10 }
   0x5   :  { %p345_p0 = scmp.ne.s32.totalorder %s20_s10, %s344_s11  ;;  %p350_p2 = scmp.lt.s32.totalorder %s344_s11, %s344_s11 }
   0x7   :  { %p351_p3 = por %p350_p2, %p349_p1 }
   0x9   :  { %p352_p4 = pnand %p351_p3, %p345_p0 }
   0xb   :  { %355 = shalt.err (!%p352_p4)
}
   0xc   :  { %s403_s12 = smov 128   ;;  %s404_s13 = smov 8  }
   0xd   :  { %25 = dma.hbm_to_vmem [thread:$0]  %s602_s0, 512, %s20_s10, [#allocation4], %s403_s12, %s403_s12, %s404_s13  }
   0xe   :  { %s405_s16 = smov [#allocation6]  }
   0xf   :  { %s35_s17 = sshll.u32 %s405_s16, 4  ;;  %s36_s17 = int_to_ptr.vmem [resolvable:$true] %s35_s17 }
  0x10   :  { %s364_s18 = scalar_lea.vmem %s36_s17, 512  ;;  %p369_p6 = scmp.lt.s32.totalorder %s36_s17, %s36_s17 }
  0x11   :  { %p365_p5 = scmp.ne.s32.totalorder %s36_s17, %s364_s18  ;;  %p370_p7 = scmp.lt.s32.totalorder %s364_s18, %s364_s18 }
  0x13   :  { %p371_p8 = por %p370_p7, %p369_p6 }
  0x15   :  { %p372_p9 = pnand %p371_p8, %p365_p5 }
  0x17   :  { %375 = shalt.err (!%p372_p9)
}
  0x18   :  { %41 = dma.hbm_to_vmem [thread:$0]  %s603_s1, 512, %s36_s17, [#allocation7], %s403_s12, %s403_s12, %s404_s13  }
  0x19   :  { %396 = dma.done.wait [#allocation4], 512  }
  0x1a   :  { %397 = vsyncadd [#allocation4], 4294966784 }
  0x1b   :  { %398 = dma.done.wait [#allocation7], 512  }
  0x1c   :  { %399 = vsyncadd [#allocation7], 4294966784  ;;  %v428_v0 = vld [vmem:[#allocation3] sm:$0xff]  ;;  %v430_v1 = vld [vmem:[#allocation3 + $0x8] sm:$0xff]  ;;  %s406_s0 = smov [#allocation8]  }
  0x1d   :  { %v432_v2 = vld [vmem:[#allocation3 + $0x10] sm:$0xff]  ;;  %v434_v3 = vld [vmem:[#allocation3 + $0x18] sm:$0xff]  ;;  %v68_v4 = vand.u32 2147483647, %v428_v0  ;;  %v69_v5 = vand.u32 2147483647, %v430_v1 }
  0x1e   :  { %v70_v6 = vand.u32 2147483647, %v432_v2  ;;  %v71_v7 = vand.u32 2147483647, %v434_v3  ;;  %v452_v24 = vld [vmem:[#allocation6] sm:$0xff]  ;;  %v454_v25 = vld [vmem:[#allocation6 + $0x8] sm:$0xff] }
  0x1f   :  { %v72_v8 = vsub.f32 0.0, %v68_v4  ;;  %v73_v9 = vsub.f32 0.0, %v69_v5  ;;  %v456_v26 = vld [vmem:[#allocation6 + $0x10] sm:$0xff]  ;;  %v458_v27 = vld [vmem:[#allocation6 + $0x18] sm:$0xff]  ;;  %v84_v28 = vmax.f32 %v428_v0, 0.0  ;;  %v88_v29 = vmul.f32 %v452_v24, %v428_v0  ;;  %s287_s1 = sshll.u32 %s406_s0, 4  ;;  %s288_s1 = int_to_ptr.vmem [resolvable:$true] %s287_s1 }
  0x20   :  { %v74_v10 = vsub.f32 0.0, %v70_v6  ;;  %v75_v11 = vsub.f32 0.0, %v71_v7  ;;  %v465_v30 = vmul.f32 %v454_v25, %v430_v1  ;;  %v85_v32 = vmax.f32 %v430_v1, 0.0  ;;  %s376_s22 = scalar_lea.vmem %s288_s1, 128  ;;  %p381_p11 = scmp.lt.s32.totalorder %s288_s1, %s288_s1 }
  0x21   :  { %v76_v12 = vmul.f32 1.442695, %v72_v8  ;;  %v78_v13 = vmul.f32 1.442695, %v73_v9  ;;  %vm148_vm0 = vcmp.ge.f32.partialorder %v428_v0, 0.0  ;;  %vm149_vm1 = vcmp.ge.f32.partialorder %v430_v1, 0.0  ;;  %p377_p10 = scmp.ne.s32.totalorder %s288_s1, %s376_s22  ;;  %p382_p12 = scmp.lt.s32.totalorder %s376_s22, %s376_s22 }
  0x22   :  { %v80_v14 = vmul.f32 1.442695, %v74_v10  ;;  %v82_v15 = vmul.f32 1.442695, %v75_v11  ;;  %vm150_vm2 = vcmp.ge.f32.partialorder %v432_v2, 0.0  ;;  %vm151_vm3 = vcmp.ge.f32.partialorder %v434_v3, 0.0 }
  0x23   :  { %304 = vpow2.f32 %v76_v12  ;;  %v164_v35 = vsub.f32 1.0, %v452_v24  ;;  %v165_v36 = vsub.f32 1.0, %v454_v25  ;;  %v166_v39 = vsub.f32 1.0, %v456_v26  ;;  %p383_p13 = por %p382_p12, %p381_p11 }
  0x24   :  { %306 = vpow2.f32 %v78_v13  ;;  %v167_v40 = vsub.f32 1.0, %v458_v27  ;;  %v86_v57 = vmax.f32 %v432_v2, 0.0  ;;  %v87_v61 = vmax.f32 %v434_v3, 0.0 }
  0x25   :  { %308 = vpow2.f32 %v80_v14  ;;  %v90_v62 = vmul.f32 %v456_v26, %v432_v2  ;;  %v91_v2 = vmul.f32 %v458_v27, %v434_v3  ;;  %v92_v13 = vsub.f32 %v84_v28, %v88_v29  ;;  %p384_p0 = pnand %p383_p13, %p377_p10 }
  0x26   :  { %310 = vpow2.f32 %v82_v15 }
  0x30   :  { %v440_v16 = vpop.eup %304 }
  0x31   :  { %v442_v17 = vpop.eup %306  ;;  %v96_v20 = vadd.f32 1.0, %v440_v16  ;;  %v99_v42 = vmul.f32 -0.5, %v440_v16  ;;  %v102_v5 = vand.u32 2147483647, %v440_v16 }
  0x32   :  { %v444_v18 = vpop.eup %308  ;;  %v105_v21 = vadd.f32 1.0, %v442_v17  ;;  %v108_v49 = vmul.f32 -0.5, %v442_v17 }
  0x33   :  { %v446_v19 = vpop.eup %310  ;;  %v114_v22 = vadd.f32 1.0, %v444_v18  ;;  %312 = vrcp.f32 %v96_v20  ;;  %v100_v4 = vadd.f32 1.0, %v99_v42  ;;  %v117_v9 = vmul.f32 -0.5, %v444_v18 }
  0x34   :  { %v123_v23 = vadd.f32 1.0, %v446_v19  ;;  %314 = vrcp.f32 %v105_v21  ;;  %v109_v8 = vadd.f32 1.0, %v108_v49  ;;  %vm515_vm4 = vcmp.lt.f32.partialorder %v102_v5, 0.0004427343 }
  0x35   :  { %316 = vrcp.f32 %v114_v22  ;;  %v118_v29 = vadd.f32 1.0, %v117_v9  ;;  %v94_v49 = vsub.f32 %v86_v57, %v90_v62 }
  0x36   :  { %318 = vrcp.f32 %v123_v23  ;;  %v110_v28 = vmul.f32 %v442_v17, %v109_v8 }
  0x37   :  { %320 = vlog2.f32 %v96_v20 }
  0x38   :  { %322 = vlog2.f32 %v105_v21  ;;  %v111_v21 = vand.u32 2147483647, %v442_v17 }
  0x39   :  { %324 = vlog2.f32 %v114_v22  ;;  %v126_v22 = vmul.f32 -0.5, %v446_v19 }
  0x3a   :  { %326 = vlog2.f32 %v123_v23  ;;  %vm528_vm5 = vcmp.lt.f32.partialorder %v111_v21, 0.0004427343 }
  0x40   :  { %v313_v31 = vpop.eup %312 }
  0x41   :  { %v315_v33 = vpop.eup %314  ;;  %v152_v34 = vmul.f32 %v313_v31, %v440_v16 }
  0x42   :  { %v317_v37 = vpop.eup %316  ;;  %v153_v38 = vmul.f32 %v315_v33, %v442_v17  ;;  %v127_v17 = vadd.f32 1.0, %v126_v22 }
  0x43   :  { %v319_v41 = vpop.eup %318  ;;  %v154_v43 = vmul.f32 %v317_v37, %v444_v18  ;;  %v156_v44 = vsel %vm148_vm0, %v313_v31, %v152_v34 }
  0x44   :  { %v155_v45 = vmul.f32 %v319_v41, %v446_v19  ;;  %v157_v46 = vsel %vm149_vm1, %v315_v33, %v153_v38  ;;  %v160_v47 = vmul.f32 %v156_v44, %v452_v24  ;;  %v168_v48 = vsub.f32 1.0, %v156_v44  ;;  %v321_v12 = vpop.eup %320 }
  0x45   :  { %v158_v50 = vsel %vm150_vm2, %v317_v37, %v154_v43  ;;  %v161_v51 = vmul.f32 %v157_v46, %v454_v25  ;;  %v169_v52 = vsub.f32 1.0, %v157_v46  ;;  %v323_v20 = vpop.eup %322  ;;  %v101_v33 = vmul.f32 %v440_v16, %v100_v4 }
  0x46   :  { %v159_v53 = vsel %vm151_vm3, %v319_v41, %v155_v45  ;;  %v162_v54 = vmul.f32 %v158_v50, %v456_v26  ;;  %v170_v55 = vsub.f32 1.0, %v158_v50  ;;  %v172_v56 = vmul.f32 %v168_v48, %v164_v35  ;;  %v325_v42 = vpop.eup %324 }
  0x47   :  { %v163_v58 = vmul.f32 %v159_v53, %v458_v27  ;;  %v171_v59 = vsub.f32 1.0, %v159_v53  ;;  %v173_v60 = vmul.f32 %v169_v52, %v165_v36  ;;  %v98_v43 = vmul.f32 0.6931472, %v321_v12  ;;  %v327_v16 = vpop.eup %326 }
  0x48   :  { %v174_v63 = vmul.f32 %v170_v55, %v166_v39  ;;  %v176_v0 = vadd.f32 %v172_v56, %v160_v47  ;;  %v107_v44 = vmul.f32 0.6931472, %v323_v20  ;;  %v120_v47 = vand.u32 2147483647, %v444_v18 }
  0x49   :  { %v175_v6 = vmul.f32 %v171_v59, %v167_v40  ;;  %v177_v7 = vadd.f32 %v173_v60, %v161_v51  ;;  %v93_v48 = vsub.f32 %v85_v32, %v465_v30  ;;  %v129_v50 = vand.u32 2147483647, %v446_v19 }
  0x4a   :  { %v178_v10 = vadd.f32 %v174_v63, %v162_v54  ;;  %v192_v11 = vsub.f32 1.0, %v176_v0  ;;  %v180_v51 = vmul.f32 0.25, %v452_v24  ;;  %v181_v52 = vmul.f32 0.25, %v454_v25 }
  0x4b   :  { %v179_v14 = vadd.f32 %v175_v6, %v163_v58  ;;  %v193_v15 = vsub.f32 1.0, %v177_v7  ;;  %v184_v53 = vmul.f32 0.75, %v164_v35  ;;  %v185_v54 = vmul.f32 0.75, %v165_v36 }
  0x4c   :  { %v194_v23 = vsub.f32 1.0, %v178_v10  ;;  %v512_v31 = vmax.f32 %v192_v11, 0.0  ;;  %v104_v55 = vsel %vm515_vm4, %v101_v33, %v98_v43  ;;  %v113_v1 = vsel %vm528_vm5, %v110_v28, %v107_v44 }
  0x4d   :  { %v195_v37 = vsub.f32 1.0, %v179_v14  ;;  %v519_v38 = vmax.f32 %v193_v15, 0.0  ;;  %v116_v30 = vmul.f32 0.6931472, %v325_v42  ;;  %v119_v32 = vmul.f32 %v444_v18, %v118_v29 }
  0x4e   :  { %v522_v41 = vmax.f32 %v194_v23, 0.0  ;;  %328 = vrsqrt.f32 %v512_v31  ;;  %vm550_vm6 = vcmp.lt.f32.partialorder %v120_v47, 0.0004427343  ;;  %v125_v57 = vmul.f32 0.6931472, %v327_v16 }
  0x4f   :  { %v525_v45 = vmax.f32 %v195_v37, 0.0  ;;  %330 = vrsqrt.f32 %v519_v38  ;;  %v128_v24 = vmul.f32 %v446_v19, %v127_v17  ;;  %v182_v35 = vmul.f32 0.25, %v456_v26 }
  0x50   :  { %332 = vrsqrt.f32 %v522_v41  ;;  %vm556_vm7 = vcmp.lt.f32.partialorder %v129_v50, 0.0004427343  ;;  %v183_v36 = vmul.f32 0.25, %v458_v27  ;;  %v186_v58 = vmul.f32 0.75, %v166_v39 }
  0x51   :  { %334 = vrsqrt.f32 %v525_v45  ;;  %v187_v18 = vmul.f32 0.75, %v167_v40  ;;  %v132_v59 = vadd.f32 %v104_v55, %v92_v13  ;;  %v133_v60 = vadd.f32 %v113_v1, %v93_v48 }
  0x52   :  { %v188_v62 = vadd.f32 %v184_v53, %v180_v51  ;;  %v189_v63 = vadd.f32 %v185_v54, %v181_v52  ;;  %v95_v19 = vsub.f32 %v87_v61, %v91_v2  ;;  %v122_v0 = vsel %vm550_vm6, %v119_v32, %v116_v30 }
  0x53   :  { %v131_v4 = vsel %vm556_vm7, %v128_v24, %v125_v57  ;;  %v190_v5 = vadd.f32 %v186_v58, %v182_v35  ;;  %v134_v6 = vadd.f32 %v122_v0, %v94_v49  ;;  %v191_v26 = vadd.f32 %v187_v18, %v183_v36 }
  0x54   :  { %v236_v39 = vmul.f32 %v188_v62, %v132_v59  ;;  %v237_v7 = vmul.f32 %v189_v63, %v133_v60  ;;  %v135_v40 = vadd.f32 %v131_v4, %v95_v19  ;;  %vm202_vm8 = vcmp.eq.f32.partialorder %v512_v31, inf }
  0x55   :  { %vm204_vm9 = vcmp.eq.f32.partialorder %v512_v31, 0.0  ;;  %v205_v3 = vand.u32 2147483648, %v512_v31  ;;  %vm209_vm10 = vcmp.eq.f32.partialorder %v519_v38, inf  ;;  %vm211_vm11 = vcmp.eq.f32.partialorder %v519_v38, 0.0 }
  0x56   :  { %v212_v9 = vand.u32 2147483648, %v519_v38  ;;  %vm216_vm12 = vcmp.eq.f32.partialorder %v522_v41, inf  ;;  %vm218_vm13 = vcmp.eq.f32.partialorder %v522_v41, 0.0  ;;  %v219_v12 = vand.u32 2147483648, %v522_v41 }
  0x57   :  { %vm223_vm14 = vcmp.eq.f32.partialorder %v525_v45, inf  ;;  %v226_v15 = vand.u32 2147483648, %v525_v45  ;;  %vm225_vm15 = vcmp.eq.f32.partialorder %v525_v45, 0.0  ;;  %v238_v37 = vmul.f32 %v190_v5, %v134_v6 }
  0x58   :  { %v239_v43 = vmul.f32 %v191_v26, %v135_v40  ;;  %v271_v32 = vlaneseq }
  0x5a   :  { %v274_v56 = vand.u32 127, %v271_v32 }
  0x5b   :  { %v329_v27 = vpop.eup %328 }
  0x5c   :  { %v331_v61 = vpop.eup %330  ;;  %v201_v8 = vmul.f32 %v329_v27, %v512_v31  ;;  %vm276_vm1 = vcmp.eq.s32.totalorder %v274_v56, 0 }
  0x5d   :  { %v333_v10 = vpop.eup %332  ;;  %v208_v11 = vmul.f32 %v331_v61, %v519_v38 }
  0x5e   :  { %v335_v2 = vpop.eup %334  ;;  %v203_v13 = vsel %vm202_vm8, %v512_v31, %v201_v8  ;;  %v215_v14 = vmul.f32 %v333_v10, %v522_v41 }
  0x5f   :  { %v206_v20 = vsel %vm204_vm9, %v205_v3, %v203_v13  ;;  %v210_v21 = vsel %vm209_vm10, %v519_v38, %v208_v11  ;;  %v222_v22 = vmul.f32 %v335_v2, %v525_v45 }
  0x60   :  { %v213_v23 = vsel %vm211_vm11, %v212_v9, %v210_v21  ;;  %v217_v33 = vsel %vm216_vm12, %v522_v41, %v215_v14  ;;  %v228_v34 = vmul.f32 %v206_v20, %v512_v31 }
  0x61   :  { %v220_v28 = vsel %vm218_vm13, %v219_v12, %v217_v33  ;;  %v224_v29 = vsel %vm223_vm14, %v525_v45, %v222_v22  ;;  %v229_v42 = vmul.f32 %v213_v23, %v519_v38 }
  0x62   :  { %v227_v44 = vsel %vm225_vm15, %v226_v15, %v224_v29  ;;  %v230_v16 = vmul.f32 %v220_v28, %v522_v41  ;;  %v240_v46 = vmul.f32 %v236_v39, %v228_v34  ;;  %v272_v41 = vshrl.u32 %v271_v32, 7 }
  0x63   :  { %v231_v47 = vmul.f32 %v227_v44, %v525_v45  ;;  %v241_v17 = vmul.f32 %v237_v7, %v229_v42 }
  0x64   :  { %v242_v48 = vmul.f32 %v238_v37, %v230_v16  ;;  %vm275_vm0 = vcmp.eq.s32.totalorder %v272_v41, 0 }
  0x65   :  { %v243_v49 = vmul.f32 %v239_v43, %v231_v47  ;;  %v259_v50 = vadd.f32 %v241_v17, %v240_v46  ;;  %vm277_vm2 = vmand %vm275_vm0, %vm276_vm1 }
  0x67   :  { %v260_v51 = vadd.f32 %v259_v50, %v242_v48 }
  0x69   :  { %v261_v52 = vadd.f32 %v260_v51, %v243_v49 }
  0x6b   :  { %262 = vadd.xlane.f32.xlu0 %v261_v52 }
  0xf4   :  { %v263_v31 = vpop.xlane.xlu0 %262 }
  0xf5   :  { %v264_v53 = vrot.slane %v263_v31, 4 }
  0xf7   :  { %v265_v54 = vadd.f32 %v264_v53, %v263_v31 }
  0xf9   :  { %v266_v55 = vrot.slane %v265_v54, 2 }
  0xfb   :  { %v267_v1 = vadd.f32 %v266_v55, %v265_v54 }
  0xfd   :  { %v268_v38 = vrot.slane %v267_v1, 1 }
  0xff   :  { %v269_v30 = vadd.f32 %v268_v38, %v267_v1 }
 0x101   :  { %297 = vpush %v269_v30 }
 0x132   :  { %s298_s21 = spop %297 }
 0x133   :  { %v278_v45 = vstv %s298_s21 }
 0x134   :  { %v279_v57 = vsel %vm277_vm2, %v278_v45, 0.0 }
 0x135   :  { %280 = vst [vmem:[#allocation8] sm:$0xff] %v279_v57 }
 0x136   :  { %387 = shalt.err (!%p384_p0)
}
 0x137   :  { %290 = dma.vmem_to_hbm [thread:$0]  %s288_s1, 128, %s604_s2, [#allocation5]  }
 0x138   :  { %400 = dma.done.wait [#allocation5], 128  }
 0x139   :  { %401 = vsyncadd [#allocation5], 4294967168 }
 0x13a   :  { %294 = vsyncpa [#allocation4], 1 }
 0x13b   :  { %295 = vsyncpa [#allocation7], 1 }
 0x13c   :  { %296 = vsyncpa [#allocation5], 1 }

</bundles_post_ra>
